<compile_context>
chip_gen: v6e
topology: v6e:2x2x1
jax: 0.10.0
libtpu: 0.0.40
codegen_flags: <defaults>
</compile_context>

<pallas_src>
import numpy as np
import jax
import jax.numpy as jnp
from jax import lax
from jax.experimental import pallas as pl
from jax.experimental.pallas import tpu as pltpu

# Small, module-consistent sizes.
B, CIN, H, W = 2, 4, 16, 16      # batch, backbone channels, spatial
M = 8                            # embedding_size
DILS = (4, 8, 16)                # dilations of inception_2/3/4
HWPIX = H * W                    # 256 pixels per image (one grid step)
NPIX = B * HWPIX                 # 512 pixels total
NTAP = 9                         # 3x3 taps
KIM = 3 * NTAP * M               # 216 im2col features (3 branches x 9 x M)
COUT = 4 * M                     # 32 output channels

assert (W & (W - 1)) == 0, "W must be a power of two for the shift/mask trick"
W_SHIFT = W.bit_length() - 1


def inception_kernel(xt_ref, w1t_ref, wbdt_ref, o_ref, p_ref):
    # --- inception_1: 1x1 conv + ReLU, channels-major / lane-dense ----------
    # (M, CIN) @ (CIN, HW) -> (M, HW) = (8, 256): h lands in exactly the
    # layout the im2col build and the output stores want.
    h = jnp.maximum(
        jnp.dot(w1t_ref[...], xt_ref[...],
                preferred_element_type=jnp.float32), 0.0)

    # --- per-pixel coordinates for the 'same'-padding validity masks --------
    pix = lax.broadcasted_iota(jnp.int32, (M, HWPIX), 1)
    yy = pix >> W_SHIFT              # y = pix // W   (W is a power of two)
    xx = pix & (W - 1)               # x = pix %  W
    zero_tap = jnp.zeros((M, HWPIX), jnp.float32)

    # --- transposed im2col: 27 full-lane, sublane-aligned (8, 256) writes ---
    # tap value at pixel q is h at pixel q + dy*W + dx (zero outside the
    # image), realized as an XLU lane roll + VPU mask (no padded buffer).
    for br, d in enumerate(DILS):
        for ky in range(3):
            dy = (ky - 1) * d
            yok = jnp.logical_and(yy + dy >= 0, yy + dy < H)
            for kx in range(3):
                dx = (kx - 1) * d
                col = (br * NTAP + ky * 3 + kx) * M
                if abs(dy) >= H or abs(dx) >= W:
                    # statically outside the image for every pixel
                    p_ref[col:col + M, :] = zero_tap
                elif dy == 0 and dx == 0:
                    p_ref[col:col + M, :] = h
                else:
                    off = dy * W + dx
                    xok = jnp.logical_and(xx + dx >= 0, xx + dx < W)
                    shifted = pltpu.roll(h, (-off) % HWPIX, axis=1)
                    p_ref[col:col + M, :] = jnp.where(
                        jnp.logical_and(yok, xok), shifted, 0.0)

    # --- all three dilated 3x3 convs as ONE matmul + ReLU -------------------
    # (3*M, KIM) @ (KIM, HW): result is channels-major (24, 256), lane-dense,
    # with no in-kernel transpose.
    bt = jnp.maximum(
        lax.dot_general(wbdt_ref[...], p_ref[...],
                        dimension_numbers=(((1,), (0,)), ((), ())),
                        preferred_element_type=jnp.float32), 0.0)

    # --- sum fusion + channel concat as aligned, full-lane row writes -------
    o_ref[0:M, :] = bt[0:M] + bt[M:2 * M] + bt[2 * M:3 * M]    # fused
    o_ref[M:COUT, :] = bt                                      # b1, b2, b3


def _blockdiag_t(w2, w3, w4):
    """Transposed block-diagonal weight (3*M, KIM) for the fused branch matmul."""
    wbdt = jnp.zeros((3 * M, KIM), jnp.float32)
    for br, w in enumerate((w2, w3, w4)):
        blk = w.reshape(NTAP * M, M).T                         # (M_out, 9*M_in)
        wbdt = wbdt.at[br * M:(br + 1) * M,
                       br * NTAP * M:(br + 1) * NTAP * M].set(blk)
    return wbdt


@jax.jit
def inception_encoder(x, w1, w2, w3, w4):
    """x: (B, H, W, CIN) f32.  Returns (B, H, W, 4*M) f32 (NHWC)."""
    assert x.shape == (B, H, W, CIN), x.shape
    xt = x.reshape(NPIX, CIN).T            # (CIN, NPIX), channels-major
    w1t = w1.T                             # (M, CIN)
    wbdt = _blockdiag_t(w2, w3, w4)        # (3*M, KIM)

    grid_spec = pltpu.PrefetchScalarGridSpec(
        num_scalar_prefetch=0,
        grid=(B,),                         # one image per step (per core on v7x)
        in_specs=[
            pl.BlockSpec((CIN, HWPIX), lambda i: (0, i)),
            pl.BlockSpec((M, CIN), lambda i: (0, 0)),
            pl.BlockSpec((3 * M, KIM), lambda i: (0, 0)),
        ],
        out_specs=pl.BlockSpec((COUT, HWPIX), lambda i: (0, i)),
        scratch_shapes=[
            pltpu.VMEM((KIM, HWPIX), jnp.float32),   # transposed im2col patches
        ],
    )
    out_t = pl.pallas_call(
        inception_kernel,
        out_shape=jax.ShapeDtypeStruct((COUT, NPIX), jnp.float32),
        grid_spec=grid_spec,
        compiler_params=pltpu.CompilerParams(
            dimension_semantics=("parallel",)),
    )(xt, w1t, wbdt)

    # lane-dense (4*M, B*H*W) kernel output -> NHWC in the wrapper (fused by jit).
    return jnp.transpose(out_t.reshape(COUT, B, H, W), (1, 2, 3, 0))


def reference(x, w1, w2, w3, w4):
    """Plain-JAX reference matching the PyTorch forward (NHWC), f32-accurate."""
    hp = lax.Precision.HIGHEST
    h = jnp.maximum(
        lax.conv_general_dilated(
            x, w1.reshape(1, 1, CIN, M), window_strides=(1, 1), padding="SAME",
            dimension_numbers=("NHWC", "HWIO", "NHWC"), precision=hp), 0.0)

    def branch(w, d):
        wk = w.reshape(3, 3, M, M)
        return jnp.maximum(
            lax.conv_general_dilated(
                h, wk, (1, 1), "SAME", rhs_dilation=(d, d),
                dimension_numbers=("NHWC", "HWIO", "NHWC"), precision=hp), 0.0)

    b1 = branch(w2, DILS[0])
    b2 = branch(w3, DILS[1])
    b3 = branch(w4, DILS[2])
    return jnp.concatenate([b1 + b2 + b3, b1, b2, b3], axis=-1)


if __name__ == "__main__":
    key = jax.random.PRNGKey(0)
    kx, k1, k2, k3, k4 = jax.random.split(key, 5)

    # Deterministic synthetic parameters (shapes from the module __init__).
    x = jax.random.normal(kx, (B, H, W, CIN), dtype=jnp.float32)
    w1 = 0.3 * jax.random.normal(k1, (CIN, M), dtype=jnp.float32)       # 1x1 conv
    w2 = 0.2 * jax.random.normal(k2, (9, M, M), dtype=jnp.float32)      # 3x3, dil 4
    w3 = 0.2 * jax.random.normal(k3, (9, M, M), dtype=jnp.float32)      # 3x3, dil 8
    w4 = 0.2 * jax.random.normal(k4, (9, M, M), dtype=jnp.float32)      # 3x3, dil 16

    out = jax.block_until_ready(inception_encoder(x, w1, w2, w3, w4))
    ref = jax.block_until_ready(reference(x, w1, w2, w3, w4))

    assert out.shape == (B, H, W, COUT), out.shape
    err = float(np.max(np.abs(np.asarray(out) - np.asarray(ref))))
    assert np.allclose(np.asarray(out), np.asarray(ref), rtol=1e-3, atol=1e-3), \
        f"mismatch vs reference, max abs err = {err}"

    print("KERNEL_OK")
</pallas_src>

<mosaic_0001>
module attributes {stable_mosaic.version = 11 : i64} {
  func.func @inception_kernel(%arg0: i32, %arg1: memref<4x256xf32, #tpu.memory_space<vmem>>, %arg2: memref<8x4xf32, #tpu.memory_space<vmem>>, %arg3: memref<24x216xf32, #tpu.memory_space<vmem>>, %arg4: memref<32x256xf32, #tpu.memory_space<vmem>>, %arg5: memref<216x256xf32, #tpu.memory_space<vmem>>) attributes {dimension_semantics = [#tpu.dimension_semantics<parallel>], iteration_bounds = array<i64: 2>, scalar_prefetch = 0 : i64, scratch_operands = 1 : i64, tpu.core_type = #tpu.core_type<tc>, window_params = [{transform_indices = @transform_0, window_bounds = array<i64: 4, 256>}, {pipeline_mode = #tpu.pipeline_mode<synchronous>, transform_indices = @transform_1, window_bounds = array<i64: 8, 4>}, {pipeline_mode = #tpu.pipeline_mode<synchronous>, transform_indices = @transform_2, window_bounds = array<i64: 24, 216>}, {transform_indices = @transform_3, window_bounds = array<i64: 32, 256>}]} {
    %c0 = arith.constant 0 : index
    %c0_0 = arith.constant 0 : index
    %0 = vector.load %arg2[%c0, %c0_0] : memref<8x4xf32, #tpu.memory_space<vmem>>, vector<8x4xf32>
    %c0_1 = arith.constant 0 : index
    %c0_2 = arith.constant 0 : index
    %1 = vector.load %arg1[%c0_1, %c0_2] : memref<4x256xf32, #tpu.memory_space<vmem>>, vector<4x256xf32>
    %cst = arith.constant dense<0.000000e+00> : vector<8x256xf32>
    %2 = tpu.matmul %0, %1, %cst {dimension_numbers = #tpu.dot_dimension_numbers<[1], [0], [0], [1], [0, 0, 1, 1], [], []>} : vector<8x4xf32>, vector<4x256xf32>, vector<8x256xf32> -> vector<8x256xf32>
    %cst_3 = arith.constant 0.000000e+00 : f32
    %3 = vector.broadcast %cst_3 : f32 to vector<8x256xf32>
    %4 = arith.maximumf %2, %3 : vector<8x256xf32>
    %5 = tpu.iota {dimensions = array<i32: 1>} : vector<8x256xi32>
    %c4_i32 = arith.constant 4 : i32
    %6 = vector.broadcast %c4_i32 : i32 to vector<8x256xi32>
    %7 = arith.shrsi %5, %6 : vector<8x256xi32>
    %c15_i32 = arith.constant 15 : i32
    %8 = vector.broadcast %c15_i32 : i32 to vector<8x256xi32>
    %9 = arith.andi %5, %8 : vector<8x256xi32>
    %cst_4 = arith.constant 0.000000e+00 : f32
    %10 = vector.broadcast %cst_4 : f32 to vector<8x256xf32>
    %c-4_i32 = arith.constant -4 : i32
    %11 = vector.broadcast %c-4_i32 : i32 to vector<8x256xi32>
    %12 = arith.addi %7, %11 : vector<8x256xi32>
    %c0_i32 = arith.constant 0 : i32
    %13 = vector.broadcast %c0_i32 : i32 to vector<8x256xi32>
    %14 = arith.cmpi sge, %12, %13 : vector<8x256xi32>
    %c-4_i32_5 = arith.constant -4 : i32
    %15 = vector.broadcast %c-4_i32_5 : i32 to vector<8x256xi32>
    %16 = arith.addi %7, %15 : vector<8x256xi32>
    %c16_i32 = arith.constant 16 : i32
    %17 = vector.broadcast %c16_i32 : i32 to vector<8x256xi32>
    %18 = arith.cmpi slt, %16, %17 : vector<8x256xi32>
    %19 = arith.andi %14, %18 : vector<8x256xi1>
    %c-4_i32_6 = arith.constant -4 : i32
    %20 = vector.broadcast %c-4_i32_6 : i32 to vector<8x256xi32>
    %21 = arith.addi %9, %20 : vector<8x256xi32>
    %c0_i32_7 = arith.constant 0 : i32
    %22 = vector.broadcast %c0_i32_7 : i32 to vector<8x256xi32>
    %23 = arith.cmpi sge, %21, %22 : vector<8x256xi32>
    %c-4_i32_8 = arith.constant -4 : i32
    %24 = vector.broadcast %c-4_i32_8 : i32 to vector<8x256xi32>
    %25 = arith.addi %9, %24 : vector<8x256xi32>
    %c16_i32_9 = arith.constant 16 : i32
    %26 = vector.broadcast %c16_i32_9 : i32 to vector<8x256xi32>
    %27 = arith.cmpi slt, %25, %26 : vector<8x256xi32>
    %28 = arith.andi %23, %27 : vector<8x256xi1>
    %c68_i32 = arith.constant 68 : i32
    %29 = tpu.dynamic_rotate %4 by %c68_i32 dim 1 : vector<8x256xf32>, i32 -> vector<8x256xf32>
    %30 = arith.andi %19, %28 : vector<8x256xi1>
    %cst_10 = arith.constant 0.000000e+00 : f32
    %31 = vector.broadcast %cst_10 : f32 to vector<8x256xf32>
    %32 = arith.select %30, %29, %31 : vector<8x256xi1>, vector<8x256xf32>
    %c0_11 = arith.constant 0 : index
    %c0_12 = arith.constant 0 : index
    %33 = vector.load %arg5[%c0_11, %c0_12] : memref<216x256xf32, #tpu.memory_space<vmem>>, vector<8x256xf32>
    tpu.vector_store %arg5[%c0_11, %c0_12], %32 {strides = array<i32>} : memref<216x256xf32, #tpu.memory_space<vmem>>, vector<8x256xf32>,
    %c0_i32_13 = arith.constant 0 : i32
    %34 = vector.broadcast %c0_i32_13 : i32 to vector<8x256xi32>
    %35 = arith.addi %9, %34 : vector<8x256xi32>
    %c0_i32_14 = arith.constant 0 : i32
    %36 = vector.broadcast %c0_i32_14 : i32 to vector<8x256xi32>
    %37 = arith.cmpi sge, %35, %36 : vector<8x256xi32>
    %c0_i32_15 = arith.constant 0 : i32
    %38 = vector.broadcast %c0_i32_15 : i32 to vector<8x256xi32>
    %39 = arith.addi %9, %38 : vector<8x256xi32>
    %c16_i32_16 = arith.constant 16 : i32
    %40 = vector.broadcast %c16_i32_16 : i32 to vector<8x256xi32>
    %41 = arith.cmpi slt, %39, %40 : vector<8x256xi32>
    %42 = arith.andi %37, %41 : vector<8x256xi1>
    %c64_i32 = arith.constant 64 : i32
    %43 = tpu.dynamic_rotate %4 by %c64_i32 dim 1 : vector<8x256xf32>, i32 -> vector<8x256xf32>
    %44 = arith.andi %19, %42 : vector<8x256xi1>
    %cst_17 = arith.constant 0.000000e+00 : f32
    %45 = vector.broadcast %cst_17 : f32 to vector<8x256xf32>
    %46 = arith.select %44, %43, %45 : vector<8x256xi1>, vector<8x256xf32>
    %c8 = arith.constant 8 : index
    %c0_18 = arith.constant 0 : index
    %47 = vector.load %arg5[%c8, %c0_18] : memref<216x256xf32, #tpu.memory_space<vmem>>, vector<8x256xf32>
    tpu.vector_store %arg5[%c8, %c0_18], %46 {strides = array<i32>} : memref<216x256xf32, #tpu.memory_space<vmem>>, vector<8x256xf32>,
    %c4_i32_19 = arith.constant 4 : i32
    %48 = vector.broadcast %c4_i32_19 : i32 to vector<8x256xi32>
    %49 = arith.addi %9, %48 : vector<8x256xi32>
    %c0_i32_20 = arith.constant 0 : i32
    %50 = vector.broadcast %c0_i32_20 : i32 to vector<8x256xi32>
    %51 = arith.cmpi sge, %49, %50 : vector<8x256xi32>
    %c4_i32_21 = arith.constant 4 : i32
    %52 = vector.broadcast %c4_i32_21 : i32 to vector<8x256xi32>
    %53 = arith.addi %9, %52 : vector<8x256xi32>
    %c16_i32_22 = arith.constant 16 : i32
    %54 = vector.broadcast %c16_i32_22 : i32 to vector<8x256xi32>
    %55 = arith.cmpi slt, %53, %54 : vector<8x256xi32>
    %56 = arith.andi %51, %55 : vector<8x256xi1>
    %c60_i32 = arith.constant 60 : i32
    %57 = tpu.dynamic_rotate %4 by %c60_i32 dim 1 : vector<8x256xf32>, i32 -> vector<8x256xf32>
    %58 = arith.andi %19, %56 : vector<8x256xi1>
    %cst_23 = arith.constant 0.000000e+00 : f32
    %59 = vector.broadcast %cst_23 : f32 to vector<8x256xf32>
    %60 = arith.select %58, %57, %59 : vector<8x256xi1>, vector<8x256xf32>
    %c16 = arith.constant 16 : index
    %c0_24 = arith.constant 0 : index
    %61 = vector.load %arg5[%c16, %c0_24] : memref<216x256xf32, #tpu.memory_space<vmem>>, vector<8x256xf32>
    tpu.vector_store %arg5[%c16, %c0_24], %60 {strides = array<i32>} : memref<216x256xf32, #tpu.memory_space<vmem>>, vector<8x256xf32>,
    %c0_i32_25 = arith.constant 0 : i32
    %62 = vector.broadcast %c0_i32_25 : i32 to vector<8x256xi32>
    %63 = arith.addi %7, %62 : vector<8x256xi32>
    %c0_i32_26 = arith.constant 0 : i32
    %64 = vector.broadcast %c0_i32_26 : i32 to vector<8x256xi32>
    %65 = arith.cmpi sge, %63, %64 : vector<8x256xi32>
    %c0_i32_27 = arith.constant 0 : i32
    %66 = vector.broadcast %c0_i32_27 : i32 to vector<8x256xi32>
    %67 = arith.addi %7, %66 : vector<8x256xi32>
    %c16_i32_28 = arith.constant 16 : i32
    %68 = vector.broadcast %c16_i32_28 : i32 to vector<8x256xi32>
    %69 = arith.cmpi slt, %67, %68 : vector<8x256xi32>
    %70 = arith.andi %65, %69 : vector<8x256xi1>
    %c-4_i32_29 = arith.constant -4 : i32
    %71 = vector.broadcast %c-4_i32_29 : i32 to vector<8x256xi32>
    %72 = arith.addi %9, %71 : vector<8x256xi32>
    %c0_i32_30 = arith.constant 0 : i32
    %73 = vector.broadcast %c0_i32_30 : i32 to vector<8x256xi32>
    %74 = arith.cmpi sge, %72, %73 : vector<8x256xi32>
    %c-4_i32_31 = arith.constant -4 : i32
    %75 = vector.broadcast %c-4_i32_31 : i32 to vector<8x256xi32>
    %76 = arith.addi %9, %75 : vector<8x256xi32>
    %c16_i32_32 = arith.constant 16 : i32
    %77 = vector.broadcast %c16_i32_32 : i32 to vector<8x256xi32>
    %78 = arith.cmpi slt, %76, %77 : vector<8x256xi32>
    %79 = arith.andi %74, %78 : vector<8x256xi1>
    %c4_i32_33 = arith.constant 4 : i32
    %80 = tpu.dynamic_rotate %4 by %c4_i32_33 dim 1 : vector<8x256xf32>, i32 -> vector<8x256xf32>
    %81 = arith.andi %70, %79 : vector<8x256xi1>
    %cst_34 = arith.constant 0.000000e+00 : f32
    %82 = vector.broadcast %cst_34 : f32 to vector<8x256xf32>
    %83 = arith.select %81, %80, %82 : vector<8x256xi1>, vector<8x256xf32>
    %c24 = arith.constant 24 : index
    %c0_35 = arith.constant 0 : index
    %84 = vector.load %arg5[%c24, %c0_35] : memref<216x256xf32, #tpu.memory_space<vmem>>, vector<8x256xf32>
    tpu.vector_store %arg5[%c24, %c0_35], %83 {strides = array<i32>} : memref<216x256xf32, #tpu.memory_space<vmem>>, vector<8x256xf32>,
    %c32 = arith.constant 32 : index
    %c0_36 = arith.constant 0 : index
    %85 = vector.load %arg5[%c32, %c0_36] : memref<216x256xf32, #tpu.memory_space<vmem>>, vector<8x256xf32>
    tpu.vector_store %arg5[%c32, %c0_36], %4 {strides = array<i32>} : memref<216x256xf32, #tpu.memory_space<vmem>>, vector<8x256xf32>,
    %c4_i32_37 = arith.constant 4 : i32
    %86 = vector.broadcast %c4_i32_37 : i32 to vector<8x256xi32>
    %87 = arith.addi %9, %86 : vector<8x256xi32>
    %c0_i32_38 = arith.constant 0 : i32
    %88 = vector.broadcast %c0_i32_38 : i32 to vector<8x256xi32>
    %89 = arith.cmpi sge, %87, %88 : vector<8x256xi32>
    %c4_i32_39 = arith.constant 4 : i32
    %90 = vector.broadcast %c4_i32_39 : i32 to vector<8x256xi32>
    %91 = arith.addi %9, %90 : vector<8x256xi32>
    %c16_i32_40 = arith.constant 16 : i32
    %92 = vector.broadcast %c16_i32_40 : i32 to vector<8x256xi32>
    %93 = arith.cmpi slt, %91, %92 : vector<8x256xi32>
    %94 = arith.andi %89, %93 : vector<8x256xi1>
    %c252_i32 = arith.constant 252 : i32
    %95 = tpu.dynamic_rotate %4 by %c252_i32 dim 1 : vector<8x256xf32>, i32 -> vector<8x256xf32>
    %96 = arith.andi %70, %94 : vector<8x256xi1>
    %cst_41 = arith.constant 0.000000e+00 : f32
    %97 = vector.broadcast %cst_41 : f32 to vector<8x256xf32>
    %98 = arith.select %96, %95, %97 : vector<8x256xi1>, vector<8x256xf32>
    %c40 = arith.constant 40 : index
    %c0_42 = arith.constant 0 : index
    %99 = vector.load %arg5[%c40, %c0_42] : memref<216x256xf32, #tpu.memory_space<vmem>>, vector<8x256xf32>
    tpu.vector_store %arg5[%c40, %c0_42], %98 {strides = array<i32>} : memref<216x256xf32, #tpu.memory_space<vmem>>, vector<8x256xf32>,
    %c4_i32_43 = arith.constant 4 : i32
    %100 = vector.broadcast %c4_i32_43 : i32 to vector<8x256xi32>
    %101 = arith.addi %7, %100 : vector<8x256xi32>
    %c0_i32_44 = arith.constant 0 : i32
    %102 = vector.broadcast %c0_i32_44 : i32 to vector<8x256xi32>
    %103 = arith.cmpi sge, %101, %102 : vector<8x256xi32>
    %c4_i32_45 = arith.constant 4 : i32
    %104 = vector.broadcast %c4_i32_45 : i32 to vector<8x256xi32>
    %105 = arith.addi %7, %104 : vector<8x256xi32>
    %c16_i32_46 = arith.constant 16 : i32
    %106 = vector.broadcast %c16_i32_46 : i32 to vector<8x256xi32>
    %107 = arith.cmpi slt, %105, %106 : vector<8x256xi32>
    %108 = arith.andi %103, %107 : vector<8x256xi1>
    %c-4_i32_47 = arith.constant -4 : i32
    %109 = vector.broadcast %c-4_i32_47 : i32 to vector<8x256xi32>
    %110 = arith.addi %9, %109 : vector<8x256xi32>
    %c0_i32_48 = arith.constant 0 : i32
    %111 = vector.broadcast %c0_i32_48 : i32 to vector<8x256xi32>
    %112 = arith.cmpi sge, %110, %111 : vector<8x256xi32>
    %c-4_i32_49 = arith.constant -4 : i32
    %113 = vector.broadcast %c-4_i32_49 : i32 to vector<8x256xi32>
    %114 = arith.addi %9, %113 : vector<8x256xi32>
    %c16_i32_50 = arith.constant 16 : i32
    %115 = vector.broadcast %c16_i32_50 : i32 to vector<8x256xi32>
    %116 = arith.cmpi slt, %114, %115 : vector<8x256xi32>
    %117 = arith.andi %112, %116 : vector<8x256xi1>
    %c196_i32 = arith.constant 196 : i32
    %118 = tpu.dynamic_rotate %4 by %c196_i32 dim 1 : vector<8x256xf32>, i32 -> vector<8x256xf32>
    %119 = arith.andi %108, %117 : vector<8x256xi1>
    %cst_51 = arith.constant 0.000000e+00 : f32
    %120 = vector.broadcast %cst_51 : f32 to vector<8x256xf32>
    %121 = arith.select %119, %118, %120 : vector<8x256xi1>, vector<8x256xf32>
    %c48 = arith.constant 48 : index
    %c0_52 = arith.constant 0 : index
    %122 = vector.load %arg5[%c48, %c0_52] : memref<216x256xf32, #tpu.memory_space<vmem>>, vector<8x256xf32>
    tpu.vector_store %arg5[%c48, %c0_52], %121 {strides = array<i32>} : memref<216x256xf32, #tpu.memory_space<vmem>>, vector<8x256xf32>,
    %c0_i32_53 = arith.constant 0 : i32
    %123 = vector.broadcast %c0_i32_53 : i32 to vector<8x256xi32>
    %124 = arith.addi %9, %123 : vector<8x256xi32>
    %c0_i32_54 = arith.constant 0 : i32
    %125 = vector.broadcast %c0_i32_54 : i32 to vector<8x256xi32>
    %126 = arith.cmpi sge, %124, %125 : vector<8x256xi32>
    %c0_i32_55 = arith.constant 0 : i32
    %127 = vector.broadcast %c0_i32_55 : i32 to vector<8x256xi32>
    %128 = arith.addi %9, %127 : vector<8x256xi32>
    %c16_i32_56 = arith.constant 16 : i32
    %129 = vector.broadcast %c16_i32_56 : i32 to vector<8x256xi32>
    %130 = arith.cmpi slt, %128, %129 : vector<8x256xi32>
    %131 = arith.andi %126, %130 : vector<8x256xi1>
    %c192_i32 = arith.constant 192 : i32
    %132 = tpu.dynamic_rotate %4 by %c192_i32 dim 1 : vector<8x256xf32>, i32 -> vector<8x256xf32>
    %133 = arith.andi %108, %131 : vector<8x256xi1>
    %cst_57 = arith.constant 0.000000e+00 : f32
    %134 = vector.broadcast %cst_57 : f32 to vector<8x256xf32>
    %135 = arith.select %133, %132, %134 : vector<8x256xi1>, vector<8x256xf32>
    %c56 = arith.constant 56 : index
    %c0_58 = arith.constant 0 : index
    %136 = vector.load %arg5[%c56, %c0_58] : memref<216x256xf32, #tpu.memory_space<vmem>>, vector<8x256xf32>
    tpu.vector_store %arg5[%c56, %c0_58], %135 {strides = array<i32>} : memref<216x256xf32, #tpu.memory_space<vmem>>, vector<8x256xf32>,
    %c4_i32_59 = arith.constant 4 : i32
    %137 = vector.broadcast %c4_i32_59 : i32 to vector<8x256xi32>
    %138 = arith.addi %9, %137 : vector<8x256xi32>
    %c0_i32_60 = arith.constant 0 : i32
    %139 = vector.broadcast %c0_i32_60 : i32 to vector<8x256xi32>
    %140 = arith.cmpi sge, %138, %139 : vector<8x256xi32>
    %c4_i32_61 = arith.constant 4 : i32
    %141 = vector.broadcast %c4_i32_61 : i32 to vector<8x256xi32>
    %142 = arith.addi %9, %141 : vector<8x256xi32>
    %c16_i32_62 = arith.constant 16 : i32
    %143 = vector.broadcast %c16_i32_62 : i32 to vector<8x256xi32>
    %144 = arith.cmpi slt, %142, %143 : vector<8x256xi32>
    %145 = arith.andi %140, %144 : vector<8x256xi1>
    %c188_i32 = arith.constant 188 : i32
    %146 = tpu.dynamic_rotate %4 by %c188_i32 dim 1 : vector<8x256xf32>, i32 -> vector<8x256xf32>
    %147 = arith.andi %108, %145 : vector<8x256xi1>
    %cst_63 = arith.constant 0.000000e+00 : f32
    %148 = vector.broadcast %cst_63 : f32 to vector<8x256xf32>
    %149 = arith.select %147, %146, %148 : vector<8x256xi1>, vector<8x256xf32>
    %c64 = arith.constant 64 : index
    %c0_64 = arith.constant 0 : index
    %150 = vector.load %arg5[%c64, %c0_64] : memref<216x256xf32, #tpu.memory_space<vmem>>, vector<8x256xf32>
    tpu.vector_store %arg5[%c64, %c0_64], %149 {strides = array<i32>} : memref<216x256xf32, #tpu.memory_space<vmem>>, vector<8x256xf32>,
    %c-8_i32 = arith.constant -8 : i32
    %151 = vector.broadcast %c-8_i32 : i32 to vector<8x256xi32>
    %152 = arith.addi %7, %151 : vector<8x256xi32>
    %c0_i32_65 = arith.constant 0 : i32
    %153 = vector.broadcast %c0_i32_65 : i32 to vector<8x256xi32>
    %154 = arith.cmpi sge, %152, %153 : vector<8x256xi32>
    %c-8_i32_66 = arith.constant -8 : i32
    %155 = vector.broadcast %c-8_i32_66 : i32 to vector<8x256xi32>
    %156 = arith.addi %7, %155 : vector<8x256xi32>
    %c16_i32_67 = arith.constant 16 : i32
    %157 = vector.broadcast %c16_i32_67 : i32 to vector<8x256xi32>
    %158 = arith.cmpi slt, %156, %157 : vector<8x256xi32>
    %159 = arith.andi %154, %158 : vector<8x256xi1>
    %c-8_i32_68 = arith.constant -8 : i32
    %160 = vector.broadcast %c-8_i32_68 : i32 to vector<8x256xi32>
    %161 = arith.addi %9, %160 : vector<8x256xi32>
    %c0_i32_69 = arith.constant 0 : i32
    %162 = vector.broadcast %c0_i32_69 : i32 to vector<8x256xi32>
    %163 = arith.cmpi sge, %161, %162 : vector<8x256xi32>
    %c-8_i32_70 = arith.constant -8 : i32
    %164 = vector.broadcast %c-8_i32_70 : i32 to vector<8x256xi32>
    %165 = arith.addi %9, %164 : vector<8x256xi32>
    %c16_i32_71 = arith.constant 16 : i32
    %166 = vector.broadcast %c16_i32_71 : i32 to vector<8x256xi32>
    %167 = arith.cmpi slt, %165, %166 : vector<8x256xi32>
    %168 = arith.andi %163, %167 : vector<8x256xi1>
    %c136_i32 = arith.constant 136 : i32
    %169 = tpu.dynamic_rotate %4 by %c136_i32 dim 1 : vector<8x256xf32>, i32 -> vector<8x256xf32>
    %170 = arith.andi %159, %168 : vector<8x256xi1>
    %cst_72 = arith.constant 0.000000e+00 : f32
    %171 = vector.broadcast %cst_72 : f32 to vector<8x256xf32>
    %172 = arith.select %170, %169, %171 : vector<8x256xi1>, vector<8x256xf32>
    %c72 = arith.constant 72 : index
    %c0_73 = arith.constant 0 : index
    %173 = vector.load %arg5[%c72, %c0_73] : memref<216x256xf32, #tpu.memory_space<vmem>>, vector<8x256xf32>
    tpu.vector_store %arg5[%c72, %c0_73], %172 {strides = array<i32>} : memref<216x256xf32, #tpu.memory_space<vmem>>, vector<8x256xf32>,
    %c0_i32_74 = arith.constant 0 : i32
    %174 = vector.broadcast %c0_i32_74 : i32 to vector<8x256xi32>
    %175 = arith.addi %9, %174 : vector<8x256xi32>
    %c0_i32_75 = arith.constant 0 : i32
    %176 = vector.broadcast %c0_i32_75 : i32 to vector<8x256xi32>
    %177 = arith.cmpi sge, %175, %176 : vector<8x256xi32>
    %c0_i32_76 = arith.constant 0 : i32
    %178 = vector.broadcast %c0_i32_76 : i32 to vector<8x256xi32>
    %179 = arith.addi %9, %178 : vector<8x256xi32>
    %c16_i32_77 = arith.constant 16 : i32
    %180 = vector.broadcast %c16_i32_77 : i32 to vector<8x256xi32>
    %181 = arith.cmpi slt, %179, %180 : vector<8x256xi32>
    %182 = arith.andi %177, %181 : vector<8x256xi1>
    %c128_i32 = arith.constant 128 : i32
    %183 = tpu.dynamic_rotate %4 by %c128_i32 dim 1 : vector<8x256xf32>, i32 -> vector<8x256xf32>
    %184 = arith.andi %159, %182 : vector<8x256xi1>
    %cst_78 = arith.constant 0.000000e+00 : f32
    %185 = vector.broadcast %cst_78 : f32 to vector<8x256xf32>
    %186 = arith.select %184, %183, %185 : vector<8x256xi1>, vector<8x256xf32>
    %c80 = arith.constant 80 : index
    %c0_79 = arith.constant 0 : index
    %187 = vector.load %arg5[%c80, %c0_79] : memref<216x256xf32, #tpu.memory_space<vmem>>, vector<8x256xf32>
    tpu.vector_store %arg5[%c80, %c0_79], %186 {strides = array<i32>} : memref<216x256xf32, #tpu.memory_space<vmem>>, vector<8x256xf32>,
    %c8_i32 = arith.constant 8 : i32
    %188 = vector.broadcast %c8_i32 : i32 to vector<8x256xi32>
    %189 = arith.addi %9, %188 : vector<8x256xi32>
    %c0_i32_80 = arith.constant 0 : i32
    %190 = vector.broadcast %c0_i32_80 : i32 to vector<8x256xi32>
    %191 = arith.cmpi sge, %189, %190 : vector<8x256xi32>
    %c8_i32_81 = arith.constant 8 : i32
    %192 = vector.broadcast %c8_i32_81 : i32 to vector<8x256xi32>
    %193 = arith.addi %9, %192 : vector<8x256xi32>
    %c16_i32_82 = arith.constant 16 : i32
    %194 = vector.broadcast %c16_i32_82 : i32 to vector<8x256xi32>
    %195 = arith.cmpi slt, %193, %194 : vector<8x256xi32>
    %196 = arith.andi %191, %195 : vector<8x256xi1>
    %c120_i32 = arith.constant 120 : i32
    %197 = tpu.dynamic_rotate %4 by %c120_i32 dim 1 : vector<8x256xf32>, i32 -> vector<8x256xf32>
    %198 = arith.andi %159, %196 : vector<8x256xi1>
    %cst_83 = arith.constant 0.000000e+00 : f32
    %199 = vector.broadcast %cst_83 : f32 to vector<8x256xf32>
    %200 = arith.select %198, %197, %199 : vector<8x256xi1>, vector<8x256xf32>
    %c88 = arith.constant 88 : index
    %c0_84 = arith.constant 0 : index
    %201 = vector.load %arg5[%c88, %c0_84] : memref<216x256xf32, #tpu.memory_space<vmem>>, vector<8x256xf32>
    tpu.vector_store %arg5[%c88, %c0_84], %200 {strides = array<i32>} : memref<216x256xf32, #tpu.memory_space<vmem>>, vector<8x256xf32>,
    %c0_i32_85 = arith.constant 0 : i32
    %202 = vector.broadcast %c0_i32_85 : i32 to vector<8x256xi32>
    %203 = arith.addi %7, %202 : vector<8x256xi32>
    %c0_i32_86 = arith.constant 0 : i32
    %204 = vector.broadcast %c0_i32_86 : i32 to vector<8x256xi32>
    %205 = arith.cmpi sge, %203, %204 : vector<8x256xi32>
    %c0_i32_87 = arith.constant 0 : i32
    %206 = vector.broadcast %c0_i32_87 : i32 to vector<8x256xi32>
    %207 = arith.addi %7, %206 : vector<8x256xi32>
    %c16_i32_88 = arith.constant 16 : i32
    %208 = vector.broadcast %c16_i32_88 : i32 to vector<8x256xi32>
    %209 = arith.cmpi slt, %207, %208 : vector<8x256xi32>
    %210 = arith.andi %205, %209 : vector<8x256xi1>
    %c-8_i32_89 = arith.constant -8 : i32
    %211 = vector.broadcast %c-8_i32_89 : i32 to vector<8x256xi32>
    %212 = arith.addi %9, %211 : vector<8x256xi32>
    %c0_i32_90 = arith.constant 0 : i32
    %213 = vector.broadcast %c0_i32_90 : i32 to vector<8x256xi32>
    %214 = arith.cmpi sge, %212, %213 : vector<8x256xi32>
    %c-8_i32_91 = arith.constant -8 : i32
    %215 = vector.broadcast %c-8_i32_91 : i32 to vector<8x256xi32>
    %216 = arith.addi %9, %215 : vector<8x256xi32>
    %c16_i32_92 = arith.constant 16 : i32
    %217 = vector.broadcast %c16_i32_92 : i32 to vector<8x256xi32>
    %218 = arith.cmpi slt, %216, %217 : vector<8x256xi32>
    %219 = arith.andi %214, %218 : vector<8x256xi1>
    %c8_i32_93 = arith.constant 8 : i32
    %220 = tpu.dynamic_rotate %4 by %c8_i32_93 dim 1 : vector<8x256xf32>, i32 -> vector<8x256xf32>
    %221 = arith.andi %210, %219 : vector<8x256xi1>
    %cst_94 = arith.constant 0.000000e+00 : f32
    %222 = vector.broadcast %cst_94 : f32 to vector<8x256xf32>
    %223 = arith.select %221, %220, %222 : vector<8x256xi1>, vector<8x256xf32>
    %c96 = arith.constant 96 : index
    %c0_95 = arith.constant 0 : index
    %224 = vector.load %arg5[%c96, %c0_95] : memref<216x256xf32, #tpu.memory_space<vmem>>, vector<8x256xf32>
    tpu.vector_store %arg5[%c96, %c0_95], %223 {strides = array<i32>} : memref<216x256xf32, #tpu.memory_space<vmem>>, vector<8x256xf32>,
    %c104 = arith.constant 104 : index
    %c0_96 = arith.constant 0 : index
    %225 = vector.load %arg5[%c104, %c0_96] : memref<216x256xf32, #tpu.memory_space<vmem>>, vector<8x256xf32>
    tpu.vector_store %arg5[%c104, %c0_96], %4 {strides = array<i32>} : memref<216x256xf32, #tpu.memory_space<vmem>>, vector<8x256xf32>,
    %c8_i32_97 = arith.constant 8 : i32
    %226 = vector.broadcast %c8_i32_97 : i32 to vector<8x256xi32>
    %227 = arith.addi %9, %226 : vector<8x256xi32>
    %c0_i32_98 = arith.constant 0 : i32
    %228 = vector.broadcast %c0_i32_98 : i32 to vector<8x256xi32>
    %229 = arith.cmpi sge, %227, %228 : vector<8x256xi32>
    %c8_i32_99 = arith.constant 8 : i32
    %230 = vector.broadcast %c8_i32_99 : i32 to vector<8x256xi32>
    %231 = arith.addi %9, %230 : vector<8x256xi32>
    %c16_i32_100 = arith.constant 16 : i32
    %232 = vector.broadcast %c16_i32_100 : i32 to vector<8x256xi32>
    %233 = arith.cmpi slt, %231, %232 : vector<8x256xi32>
    %234 = arith.andi %229, %233 : vector<8x256xi1>
    %c248_i32 = arith.constant 248 : i32
    %235 = tpu.dynamic_rotate %4 by %c248_i32 dim 1 : vector<8x256xf32>, i32 -> vector<8x256xf32>
    %236 = arith.andi %210, %234 : vector<8x256xi1>
    %cst_101 = arith.constant 0.000000e+00 : f32
    %237 = vector.broadcast %cst_101 : f32 to vector<8x256xf32>
    %238 = arith.select %236, %235, %237 : vector<8x256xi1>, vector<8x256xf32>
    %c112 = arith.constant 112 : index
    %c0_102 = arith.constant 0 : index
    %239 = vector.load %arg5[%c112, %c0_102] : memref<216x256xf32, #tpu.memory_space<vmem>>, vector<8x256xf32>
    tpu.vector_store %arg5[%c112, %c0_102], %238 {strides = array<i32>} : memref<216x256xf32, #tpu.memory_space<vmem>>, vector<8x256xf32>,
    %c8_i32_103 = arith.constant 8 : i32
    %240 = vector.broadcast %c8_i32_103 : i32 to vector<8x256xi32>
    %241 = arith.addi %7, %240 : vector<8x256xi32>
    %c0_i32_104 = arith.constant 0 : i32
    %242 = vector.broadcast %c0_i32_104 : i32 to vector<8x256xi32>
    %243 = arith.cmpi sge, %241, %242 : vector<8x256xi32>
    %c8_i32_105 = arith.constant 8 : i32
    %244 = vector.broadcast %c8_i32_105 : i32 to vector<8x256xi32>
    %245 = arith.addi %7, %244 : vector<8x256xi32>
    %c16_i32_106 = arith.constant 16 : i32
    %246 = vector.broadcast %c16_i32_106 : i32 to vector<8x256xi32>
    %247 = arith.cmpi slt, %245, %246 : vector<8x256xi32>
    %248 = arith.andi %243, %247 : vector<8x256xi1>
    %c-8_i32_107 = arith.constant -8 : i32
    %249 = vector.broadcast %c-8_i32_107 : i32 to vector<8x256xi32>
    %250 = arith.addi %9, %249 : vector<8x256xi32>
    %c0_i32_108 = arith.constant 0 : i32
    %251 = vector.broadcast %c0_i32_108 : i32 to vector<8x256xi32>
    %252 = arith.cmpi sge, %250, %251 : vector<8x256xi32>
    %c-8_i32_109 = arith.constant -8 : i32
    %253 = vector.broadcast %c-8_i32_109 : i32 to vector<8x256xi32>
    %254 = arith.addi %9, %253 : vector<8x256xi32>
    %c16_i32_110 = arith.constant 16 : i32
    %255 = vector.broadcast %c16_i32_110 : i32 to vector<8x256xi32>
    %256 = arith.cmpi slt, %254, %255 : vector<8x256xi32>
    %257 = arith.andi %252, %256 : vector<8x256xi1>
    %c136_i32_111 = arith.constant 136 : i32
    %258 = tpu.dynamic_rotate %4 by %c136_i32_111 dim 1 : vector<8x256xf32>, i32 -> vector<8x256xf32>
    %259 = arith.andi %248, %257 : vector<8x256xi1>
    %cst_112 = arith.constant 0.000000e+00 : f32
    %260 = vector.broadcast %cst_112 : f32 to vector<8x256xf32>
    %261 = arith.select %259, %258, %260 : vector<8x256xi1>, vector<8x256xf32>
    %c120 = arith.constant 120 : index
    %c0_113 = arith.constant 0 : index
    %262 = vector.load %arg5[%c120, %c0_113] : memref<216x256xf32, #tpu.memory_space<vmem>>, vector<8x256xf32>
    tpu.vector_store %arg5[%c120, %c0_113], %261 {strides = array<i32>} : memref<216x256xf32, #tpu.memory_space<vmem>>, vector<8x256xf32>,
    %c0_i32_114 = arith.constant 0 : i32
    %263 = vector.broadcast %c0_i32_114 : i32 to vector<8x256xi32>
    %264 = arith.addi %9, %263 : vector<8x256xi32>
    %c0_i32_115 = arith.constant 0 : i32
    %265 = vector.broadcast %c0_i32_115 : i32 to vector<8x256xi32>
    %266 = arith.cmpi sge, %264, %265 : vector<8x256xi32>
    %c0_i32_116 = arith.constant 0 : i32
    %267 = vector.broadcast %c0_i32_116 : i32 to vector<8x256xi32>
    %268 = arith.addi %9, %267 : vector<8x256xi32>
    %c16_i32_117 = arith.constant 16 : i32
    %269 = vector.broadcast %c16_i32_117 : i32 to vector<8x256xi32>
    %270 = arith.cmpi slt, %268, %269 : vector<8x256xi32>
    %271 = arith.andi %266, %270 : vector<8x256xi1>
    %c128_i32_118 = arith.constant 128 : i32
    %272 = tpu.dynamic_rotate %4 by %c128_i32_118 dim 1 : vector<8x256xf32>, i32 -> vector<8x256xf32>
    %273 = arith.andi %248, %271 : vector<8x256xi1>
    %cst_119 = arith.constant 0.000000e+00 : f32
    %274 = vector.broadcast %cst_119 : f32 to vector<8x256xf32>
    %275 = arith.select %273, %272, %274 : vector<8x256xi1>, vector<8x256xf32>
    %c128 = arith.constant 128 : index
    %c0_120 = arith.constant 0 : index
    %276 = vector.load %arg5[%c128, %c0_120] : memref<216x256xf32, #tpu.memory_space<vmem>>, vector<8x256xf32>
    tpu.vector_store %arg5[%c128, %c0_120], %275 {strides = array<i32>} : memref<216x256xf32, #tpu.memory_space<vmem>>, vector<8x256xf32>,
    %c8_i32_121 = arith.constant 8 : i32
    %277 = vector.broadcast %c8_i32_121 : i32 to vector<8x256xi32>
    %278 = arith.addi %9, %277 : vector<8x256xi32>
    %c0_i32_122 = arith.constant 0 : i32
    %279 = vector.broadcast %c0_i32_122 : i32 to vector<8x256xi32>
    %280 = arith.cmpi sge, %278, %279 : vector<8x256xi32>
    %c8_i32_123 = arith.constant 8 : i32
    %281 = vector.broadcast %c8_i32_123 : i32 to vector<8x256xi32>
    %282 = arith.addi %9, %281 : vector<8x256xi32>
    %c16_i32_124 = arith.constant 16 : i32
    %283 = vector.broadcast %c16_i32_124 : i32 to vector<8x256xi32>
    %284 = arith.cmpi slt, %282, %283 : vector<8x256xi32>
    %285 = arith.andi %280, %284 : vector<8x256xi1>
    %c120_i32_125 = arith.constant 120 : i32
    %286 = tpu.dynamic_rotate %4 by %c120_i32_125 dim 1 : vector<8x256xf32>, i32 -> vector<8x256xf32>
    %287 = arith.andi %248, %285 : vector<8x256xi1>
    %cst_126 = arith.constant 0.000000e+00 : f32
    %288 = vector.broadcast %cst_126 : f32 to vector<8x256xf32>
    %289 = arith.select %287, %286, %288 : vector<8x256xi1>, vector<8x256xf32>
    %c136 = arith.constant 136 : index
    %c0_127 = arith.constant 0 : index
    %290 = vector.load %arg5[%c136, %c0_127] : memref<216x256xf32, #tpu.memory_space<vmem>>, vector<8x256xf32>
    tpu.vector_store %arg5[%c136, %c0_127], %289 {strides = array<i32>} : memref<216x256xf32, #tpu.memory_space<vmem>>, vector<8x256xf32>,
    %c144 = arith.constant 144 : index
    %c0_128 = arith.constant 0 : index
    %291 = vector.load %arg5[%c144, %c0_128] : memref<216x256xf32, #tpu.memory_space<vmem>>, vector<8x256xf32>
    tpu.vector_store %arg5[%c144, %c0_128], %10 {strides = array<i32>} : memref<216x256xf32, #tpu.memory_space<vmem>>, vector<8x256xf32>,
    %c152 = arith.constant 152 : index
    %c0_129 = arith.constant 0 : index
    %292 = vector.load %arg5[%c152, %c0_129] : memref<216x256xf32, #tpu.memory_space<vmem>>, vector<8x256xf32>
    tpu.vector_store %arg5[%c152, %c0_129], %10 {strides = array<i32>} : memref<216x256xf32, #tpu.memory_space<vmem>>, vector<8x256xf32>,
    %c160 = arith.constant 160 : index
    %c0_130 = arith.constant 0 : index
    %293 = vector.load %arg5[%c160, %c0_130] : memref<216x256xf32, #tpu.memory_space<vmem>>, vector<8x256xf32>
    tpu.vector_store %arg5[%c160, %c0_130], %10 {strides = array<i32>} : memref<216x256xf32, #tpu.memory_space<vmem>>, vector<8x256xf32>,
    %c168 = arith.constant 168 : index
    %c0_131 = arith.constant 0 : index
    %294 = vector.load %arg5[%c168, %c0_131] : memref<216x256xf32, #tpu.memory_space<vmem>>, vector<8x256xf32>
    tpu.vector_store %arg5[%c168, %c0_131], %10 {strides = array<i32>} : memref<216x256xf32, #tpu.memory_space<vmem>>, vector<8x256xf32>,
    %c176 = arith.constant 176 : index
    %c0_132 = arith.constant 0 : index
    %295 = vector.load %arg5[%c176, %c0_132] : memref<216x256xf32, #tpu.memory_space<vmem>>, vector<8x256xf32>
    tpu.vector_store %arg5[%c176, %c0_132], %4 {strides = array<i32>} : memref<216x256xf32, #tpu.memory_space<vmem>>, vector<8x256xf32>,
    %c184 = arith.constant 184 : index
    %c0_133 = arith.constant 0 : index
    %296 = vector.load %arg5[%c184, %c0_133] : memref<216x256xf32, #tpu.memory_space<vmem>>, vector<8x256xf32>
    tpu.vector_store %arg5[%c184, %c0_133], %10 {strides = array<i32>} : memref<216x256xf32, #tpu.memory_space<vmem>>, vector<8x256xf32>,
    %c192 = arith.constant 192 : index
    %c0_134 = arith.constant 0 : index
    %297 = vector.load %arg5[%c192, %c0_134] : memref<216x256xf32, #tpu.memory_space<vmem>>, vector<8x256xf32>
    tpu.vector_store %arg5[%c192, %c0_134], %10 {strides = array<i32>} : memref<216x256xf32, #tpu.memory_space<vmem>>, vector<8x256xf32>,
    %c200 = arith.constant 200 : index
    %c0_135 = arith.constant 0 : index
    %298 = vector.load %arg5[%c200, %c0_135] : memref<216x256xf32, #tpu.memory_space<vmem>>, vector<8x256xf32>
    tpu.vector_store %arg5[%c200, %c0_135], %10 {strides = array<i32>} : memref<216x256xf32, #tpu.memory_space<vmem>>, vector<8x256xf32>,
    %c208 = arith.constant 208 : index
    %c0_136 = arith.constant 0 : index
    %299 = vector.load %arg5[%c208, %c0_136] : memref<216x256xf32, #tpu.memory_space<vmem>>, vector<8x256xf32>
    tpu.vector_store %arg5[%c208, %c0_136], %10 {strides = array<i32>} : memref<216x256xf32, #tpu.memory_space<vmem>>, vector<8x256xf32>,
    %c0_137 = arith.constant 0 : index
    %c0_138 = arith.constant 0 : index
    %300 = vector.load %arg3[%c0_137, %c0_138] : memref<24x216xf32, #tpu.memory_space<vmem>>, vector<24x216xf32>
    %c0_139 = arith.constant 0 : index
    %c0_140 = arith.constant 0 : index
    %301 = vector.load %arg5[%c0_139, %c0_140] : memref<216x256xf32, #tpu.memory_space<vmem>>, vector<216x256xf32>
    %cst_141 = arith.constant dense<0.000000e+00> : vector<24x256xf32>
    %302 = tpu.matmul %300, %301, %cst_141 {dimension_numbers = #tpu.dot_dimension_numbers<[1], [0], [0], [1], [0, 0, 1, 1], [], []>} : vector<24x216xf32>, vector<216x256xf32>, vector<24x256xf32> -> vector<24x256xf32>
    %cst_142 = arith.constant 0.000000e+00 : f32
    %303 = vector.broadcast %cst_142 : f32 to vector<24x256xf32>
    %304 = arith.maximumf %302, %303 : vector<24x256xf32>
    %305 = vector.extract_strided_slice %304 {offsets = [0, 0], sizes = [8, 256], strides = [1, 1]} : vector<24x256xf32> to vector<8x256xf32>
    %306 = vector.extract_strided_slice %304 {offsets = [8, 0], sizes = [8, 256], strides = [1, 1]} : vector<24x256xf32> to vector<8x256xf32>
    %307 = arith.addf %305, %306 : vector<8x256xf32>
    %308 = vector.extract_strided_slice %304 {offsets = [16, 0], sizes = [8, 256], strides = [1, 1]} : vector<24x256xf32> to vector<8x256xf32>
    %309 = arith.addf %307, %308 : vector<8x256xf32>
    %c0_143 = arith.constant 0 : index
    %c0_144 = arith.constant 0 : index
    %310 = vector.load %arg4[%c0_143, %c0_144] : memref<32x256xf32, #tpu.memory_space<vmem>>, vector<8x256xf32>
    tpu.vector_store %arg4[%c0_143, %c0_144], %309 {strides = array<i32>} : memref<32x256xf32, #tpu.memory_space<vmem>>, vector<8x256xf32>,
    %c8_145 = arith.constant 8 : index
    %c0_146 = arith.constant 0 : index
    %311 = vector.load %arg4[%c8_145, %c0_146] : memref<32x256xf32, #tpu.memory_space<vmem>>, vector<24x256xf32>
    tpu.vector_store %arg4[%c8_145, %c0_146], %304 {strides = array<i32>} : memref<32x256xf32, #tpu.memory_space<vmem>>, vector<24x256xf32>,
    return
  }
  func.func @transform_0(%arg0: i32) -> (i32, i32) {
    %c0_i32 = arith.constant 0 : i32
    %c0_i32_0 = arith.constant 0 : i32
    return %c0_i32, %arg0 : i32, i32
  }
  func.func @transform_1(%arg0: i32) -> (i32, i32) {
    %c0_i32 = arith.constant 0 : i32
    %c0_i32_0 = arith.constant 0 : i32
    %c0_i32_1 = arith.constant 0 : i32
    return %c0_i32, %c0_i32_0 : i32, i32
  }
  func.func @transform_2(%arg0: i32) -> (i32, i32) {
    %c0_i32 = arith.constant 0 : i32
    %c0_i32_0 = arith.constant 0 : i32
    %c0_i32_1 = arith.constant 0 : i32
    return %c0_i32, %c0_i32_0 : i32, i32
  }
  func.func @transform_3(%arg0: i32) -> (i32, i32) {
    %c0_i32 = arith.constant 0 : i32
    %c0_i32_0 = arith.constant 0 : i32
    return %c0_i32, %arg0 : i32, i32
  }
}

</mosaic_0001>

<bundles_post_ra>
// kernel: inception_encoder.1
= control target key start
LH: loop header
LB: loop body
LE: loop exit
PB: predicated region body
PF: predicated region fallthrough
CT: control target
= control target key end

     0   :  { %s949_s12 = smov 0   ;;  %s951_s13 = smov 0   ;;  %s1471_s0 = inlined_call_operand.vmem [shape: f32[4,512], index: 0, kind: input, shape index: {}]   ;;  %s1472_s1 = inlined_call_operand.vmem [shape: f32[8,4], index: 1, kind: input, shape index: {}]   ;;  %s1473_s2 = inlined_call_operand.vmem [shape: f32[24,216], index: 2, kind: input, shape index: {}]   ;;  %s1474_s3 = inlined_call_operand.vmem [shape: f32[32,512], index: 3, kind: output, shape index: {}]  }
   0x1   :  { %s953_s14 = smov 0  }
   0x2 LB: > { %s962_s15 = sadd.s32 4294967295, %s919_s14   ;;  %s964_s16 = sadd.s32 1, %s919_s14   ;;  %s919_s14 = sphi %s953_s14, %s1533_s14   ;;  %s915_s13 = sphi %s951_s13, %s1532_s13   ;;  %s911_s12 = sphi %s949_s12, %s1531_s12  }
   0x3   : > { %s85_s17 = ssub.s32 %s919_s14, %s964_s16  ;;  %s88_s18 = sadd.s32 1, %s915_s13 }
   0x4   : > { %p86_p0 = scmp.eq.s32.totalorder %s85_s17, 0  ;;  %p98_p1 = scmp.ne.s32.totalorder %s915_s13, %s911_s12 }
   0x5   : > { %p99_p2 = scmp.eq.s32.totalorder %s962_s15, 1  ;;  %p770_p3 = scmp.ge.s32.totalorder %s919_s14, 1 }
   0x6   : > { %s972_s19 = scalar_select %p86_p0, %s915_s13, %s88_s18  }
   0x7   : > { %p974_p4 = por %p99_p2, %p98_p1  ;;  %p138_p5 = scmp.lt.s32.totalorder %s919_s14, 3 }
   0x9   : > { %p139_p6 = pnand %p770_p3, %p138_p5 }
   0xa   : > { %s772_s21 = sshll.u32 (!%p139_p6), %s962_s15, 1  ;;  %s922_s28 = smov (!%p139_p6), 120  }
   0xb   : > { %142 = sbr.rel (%p139_p6) target bundleno = 597 (0x255), region = 32  ;;  %p162_p7 = scmp.lt.s32.totalorder (!%p139_p6), %s772_s21, 3 }
   0xc   : > { %s923_s29 = smov (!%p139_p6), 8   ;;  %s924_s30 = smov (!%p139_p6), 60  }
   0xd   : > { %s925_s4 = smov (!%p139_p6), 64   ;;  %s926_s5 = smov (!%p139_p6), 68  }
   0xe   : > { %s927_s6 = smov (!%p139_p6), 124   ;;  %s928_s7 = smov (!%p139_p6), 4  }
   0xf   : > { %s158_s26 = sand.u32 (!%p139_p6), 1, %s911_s12  }
  0x10   : > { %v921_v0 = vmov 0.0   ;;  %s1535_s21 = smov (!%p162_p7, %s772_s21), 3  ;;  %vm176_vm0 = vcmask 1043456   ;;  %v168_v3 = vld [vmem:[%s1472_s1] sm:$0xff]  ;;  %vm172_vm1 = vcmask 31744   ;;  %v505_v8 = vld [vmem:[%s1473_s2 + $0x8] sm:$0xff]  ;;  %v254_v10 = vlaneseq }
  0x11   : > { %245 = vmatprep.mubr.f32.mxu0 %v921_v0  ;;  %s773_s22 = sshll.u32 %s1535_s21, 2  ;;  %vm1475_vm2 = vcmask 719872   ;;  %v507_v9 = vld [vmem:[%s1473_s2 + $0x18] sm:$0xff]  ;;  %v1488_v27 = vmov 0  ;;  %s771_s27 = sshll.u32 %s158_s26, 6 }
  0x12   : > { %s165_s25 = scalar_lea.vmem %s1471_s0, %s773_s22  ;;  %778 = vmatprep.mubr.msk.f32.mxu1 %vm1475_vm2, %v507_v9  ;;  %v1012_v11 = vand.u32 127, %v254_v10  ;;  %s785_s12 = sshll.u32 (%p974_p4), %s962_s15, 4 }
  0x13   : > { %v169_v1 = vld [vmem:[%s165_s25] sm:$0xff] }
  0x14   : > { %v171_v2 = vcombine.high %v169_v1, %v169_v1  ;;  %v256_v12 = vadd.s32 128, %v1012_v11  ;;  %v1021_v16 = vshra.s32 %v1012_v11, 4  ;;  %v1027_v18 = vand.u32 15, %v1012_v11 }
  0x16   : > { %774 = vmatprep.subr.msk.mxu0 %vm176_vm0, %v171_v2  ;;  %v1015_v13 = vshra.s32 %v256_v12, 4  ;;  %v1017_v14 = vand.u32 15, %v256_v12  ;;  %v460_v19 = vadd.s32 8, %v1021_v16  ;;  %v1036_v21 = vadd.s32 4294967288, %v1027_v18 }
  0x17   : > { %775 = vmatpush1.msk.msra.mxu0 %vm176_vm0, %v169_v1  ;;  %v1044_v23 = vadd.s32 8, %v1027_v18  ;;  %vm330_vm12 = vcmp.ge.s32.totalorder %v1021_v16, 0  ;;  %vm332_vm13 = vcmp.lt.s32.totalorder %v1021_v16, 16  ;;  %vm410_vm0 = vcmp.lt.s32.totalorder %v1012_v11, 8 }
  0x18   : > { %776 = vmatmul.mubr.msk.f32.vlgmr.msra.gmra.mxu0 %vm172_vm1, %v168_v3  ;;  %v461_v15 = vadd.s32 8, %v1015_v13  ;;  %v1024_v17 = vadd.s32 4294967288, %v1017_v14  ;;  %vm462_vm7 = vcmp.ge.s32.totalorder %v460_v19, 0  ;;  %vm464_vm8 = vcmp.lt.s32.totalorder %v460_v19, 16 }
  0x19   : > { %777 = vmatprep.mubr.msk.f32.mxu0 %vm1475_vm2, %v505_v8  ;;  %v1039_v22 = vadd.s32 8, %v1017_v14  ;;  %vm331_vm9 = vcmp.ge.s32.totalorder %v1015_v13, 0  ;;  %vm333_vm10 = vcmp.lt.s32.totalorder %v1015_v13, 16  ;;  %vm1477_vm14 = vcmp.ge.s32.totalorder %v1036_v21, 0  ;;  %vm1057_vm15 = vmand %vm462_vm7, %vm464_vm8 }
  0x1a   : > { %vm463_vm3 = vcmp.ge.s32.totalorder %v461_v15, 0  ;;  %vm465_vm4 = vcmp.lt.s32.totalorder %v461_v15, 16  ;;  %vm401_vm5 = vcmp.ge.s32.totalorder %v1024_v17, 0  ;;  %v1489_v27 = vsel %vm1057_vm15, 4294967295, %v1488_v27  ;;  %vm1063_vm1 = vmand %vm331_vm9, %vm333_vm10 }
  0x1b   : > { %vm1031_vm6 = vmand %vm463_vm3, %vm465_vm4  ;;  %v391_v28 = vadd.s32 4294967288, %v1015_v13  ;;  %vm1476_vm3 = vcmp.lt.s32.totalorder %v1039_v22, 16  ;;  %v390_v30 = vadd.s32 4294967288, %v1021_v16  ;;  %vm1478_vm7 = vcmp.lt.s32.totalorder %v1044_v23, 16 }
  0x1c   : > { %vm1050_vm11 = vmand %vm1031_vm6, %vm401_vm5  ;;  %vm437_vm8 = vcmp.lt.s32.totalorder %v1012_v11, 120  ;;  %v365_v40 = vadd.s32 4, %v1015_v13  ;;  %v364_v45 = vadd.s32 4, %v1021_v16  ;;  %v1160_v48 = vadd.s32 4, %v1017_v14 }
  0x1d   : > { %vm1069_vm4 = vmand %vm330_vm12, %vm332_vm13  ;;  %vm393_vm12 = vcmp.ge.s32.totalorder %v391_v28, 0  ;;  %vm395_vm13 = vcmp.lt.s32.totalorder %v391_v28, 16  ;;  %vm392_vm2 = vcmp.ge.s32.totalorder %v390_v30, 0  ;;  %v1169_v49 = vadd.s32 4, %v1027_v18 }
  0x1e   : > { %vm468_vm9 = vmand %vm1057_vm15, %vm1477_vm14  ;;  %v1205_v54 = vadd.s32 4294967292, %v1017_v14  ;;  %v1215_v56 = vadd.s32 4294967292, %v1027_v18  ;;  %v262_v61 = vadd.s32 4294967292, %v1015_v13  ;;  %v261_v2 = vadd.s32 4294967292, %v1021_v16 }
  0x1f   : > { %vm1087_vm10 = vmand %vm1063_vm1, %vm1476_vm3  ;;  %vm394_vm3 = vcmp.lt.s32.totalorder %v390_v30, 16 }
  0xd8   : > { %v247_v4 = vpop.f32.mrf.mxu0 }
  0xd9   : > { %v986_v5 = vmax.f32 %v247_v4, 0.0 }
  0xda   : > { %v249_v6 = vpop.f32.mrf.mxu0 }
  0xdb   : > { %433 = vrot.lane.b32.xlu1 %v986_v5, %s922_s28  ;;  %406 = vrot.lane.b32.xlu0 %v986_v5, %s923_s29  ;;  %v990_v7 = vmax.f32 %v249_v6, 0.0 }
  0xdf   : > { %435 = vrot.lane.b32.xlu1 %v990_v7, %s922_s28  ;;  %408 = vrot.lane.b32.xlu0 %v990_v7, %s923_s29  ;;  %s1437_s28 = scalar_lea.vmem [#allocation3], %s771_s27 }
  0xe3   : > { %319 = vrot.lane.b32.xlu1 %v990_v7, %s924_s30  ;;  %317 = vrot.lane.b32.xlu0 %v986_v5, %s924_s30 }
  0xe7   : > { %298 = vrot.lane.b32.xlu1 %v990_v7, %s925_s4  ;;  %296 = vrot.lane.b32.xlu0 %v986_v5, %s925_s4  ;;  %s684_s4 = scalar_lea.vmem (%p974_p4), %s1474_s3, %s785_s12 }
  0xeb   : > { %279 = vrot.lane.b32.xlu1 %v990_v7, %s926_s5  ;;  %277 = vrot.lane.b32.xlu0 %v986_v5, %s926_s5 }
  0xef   : > { %353 = vrot.lane.b32.xlu1 %v990_v7, %s927_s6  ;;  %351 = vrot.lane.b32.xlu0 %v986_v5, %s927_s6 }
  0xf3   : > { %338 = vrot.lane.b32.xlu1 %v990_v7, %s928_s7  ;;  %336 = vrot.lane.b32.xlu0 %v986_v5, %s928_s7 }
 0x14d   : > { %v434_v24 = vpop.permute.xlu1 %433  ;;  %v407_v25 = vpop.permute.xlu0 %406 }
 0x151   : > { %v436_v32 = vpop.permute.xlu1 %435  ;;  %v409_v33 = vpop.permute.xlu0 %408 }
 0x152   : > { %v1079_v34 = vsel %vm410_vm0, %v407_v25, %v409_v33  ;;  %v1081_v35 = vsel %vm410_vm0, %v409_v33, %v407_v25  ;;  %vm1101_vm0 = vmand %vm1069_vm4, %vm1478_vm7  ;;  %v1107_v38 = vsel %vm437_vm8, %v436_v32, %v434_v24  ;;  %v1122_v41 = vsel %vm437_vm8, %v434_v24, %v436_v32 }
 0x153   : > { %786 = vmatprep.subr.msk.mxu0 %vm1050_vm11, %v1081_v35  ;;  %818 = vmatprep.subr.msk.mxu1 %vm1050_vm11, %v1081_v35  ;;  %vm1115_vm11 = vmand %vm1063_vm1, %vm401_vm5 }
 0x154   : > { %787 = vmatpush1.msk.msra.mxu0 %vm468_vm9, %v1079_v34  ;;  %841 = vmatpush1.msk.msra.mxu1 %vm468_vm9, %v1079_v34  ;;  %vm1132_vm9 = vmand %vm393_vm12, %vm395_vm13  ;;  %vm367_vm12 = vcmp.ge.s32.totalorder %v365_v40, 0  ;;  %vm369_vm13 = vcmp.lt.s32.totalorder %v365_v40, 16 }
 0x155   : > { %v320_v42 = vpop.permute.xlu1 %319  ;;  %788 = vmatprep.subr.msk.mxu0 %vm1087_vm10, %v1107_v38  ;;  %819 = vmatprep.subr.msk.mxu1 %vm1087_vm10, %v1107_v38  ;;  %v318_v43 = vpop.permute.xlu0 %317  ;;  %vm1145_vm8 = vmand %vm392_vm2, %vm394_vm3  ;;  %vm1506_vm2 = vcmp.lt.s32.totalorder %v1039_v22, 16 }
 0x156   : > { %789 = vmatpush1.msk.msra.mxu0 %vm1101_vm0, %v1122_v41  ;;  %842 = vmatpush1.msk.msra.mxu1 %vm1101_vm0, %v1122_v41  ;;  %vm1155_vm10 = vmand %vm1069_vm4, %vm1477_vm14  ;;  %vm368_vm14 = vcmp.lt.s32.totalorder %v364_v45, 16 }
 0x157   : > { %578 = vmatprep.subr.mxu0 %v990_v7  ;;  %820 = vmatprep.subr.mxu1 %v990_v7  ;;  %vm441_vm3 = vmand %vm1132_vm9, %vm1506_vm2  ;;  %vm366_vm2 = vcmp.ge.s32.totalorder %v364_v45, 0 }
 0x158   : > { %579 = vmatpush1.msra.mxu0 %v986_v5  ;;  %843 = vmatpush1.msra.mxu1 %v986_v5  ;;  %vm440_vm0 = vmand %vm1145_vm8, %vm1478_vm7  ;;  %vm1482_vm7 = vcmp.lt.s32.totalorder %v1160_v48, 16 }
 0x159   : > { %v299_v50 = vpop.permute.xlu1 %298  ;;  %790 = vmatprep.subr.msk.mxu0 %vm1115_vm11, %v1079_v34  ;;  %821 = vmatprep.subr.msk.mxu1 %vm1115_vm11, %v1079_v34  ;;  %v297_v51 = vpop.permute.xlu0 %296  ;;  %vm1191_vm11 = vmand %vm1132_vm9, %vm401_vm5  ;;  %vm313_vm5 = vcmp.lt.s32.totalorder %v1169_v49, 16 }
 0x15a   : > { %791 = vmatpush1.msk.msra.mxu0 %vm1155_vm10, %v1081_v35  ;;  %844 = vmatpush1.msk.msra.mxu1 %vm1155_vm10, %v1081_v35  ;;  %vm1200_vm15 = vmand %vm367_vm12, %vm369_vm13 }
 0x15b   : > { %792 = vmatprep.subr.msk.mxu0 %vm441_vm3, %v1122_v41  ;;  %822 = vmatprep.subr.msk.mxu1 %vm441_vm3, %v1122_v41  ;;  %vm1210_vm10 = vmand %vm366_vm2, %vm368_vm14  ;;  %vm321_vm3 = vcmp.lt.s32.totalorder %v1012_v11, 60  ;;  %vm1513_vm14 = vcmp.ge.s32.totalorder %v1036_v21, 0  ;;  %vm1481_vm2 = vcmp.ge.s32.totalorder %v1215_v56, 0  ;;  %v506_v21 = vld [vmem:[%s1473_s2 + $0x10] sm:$0xff] }
 0x15c   : > { %793 = vmatpush1.msk.msra.mxu0 %vm440_vm0, %v1107_v38  ;;  %845 = vmatpush1.msk.msra.mxu1 %vm440_vm0, %v1107_v38  ;;  %vm413_vm12 = vmand %vm1145_vm8, %vm1513_vm14  ;;  %vm272_vm0 = vcmp.ge.s32.totalorder %v1205_v54, 0  ;;  %v1256_v60 = vsel %vm321_vm3, %v320_v42, %v318_v43  ;;  %v322_v62 = vsel %vm321_vm3, %v318_v43, %v320_v42  ;;  %vm355_vm14 = vcmp.lt.s32.totalorder %v1012_v11, 124 }
 0x15d   : > { %v280_v57 = vpop.permute.xlu1 %279  ;;  %794 = vmatprep.subr.msk.mxu0 %vm1132_vm9, %v986_v5  ;;  %823 = vmatprep.subr.msk.mxu1 %vm1132_vm9, %v986_v5  ;;  %v278_v58 = vpop.permute.xlu0 %277  ;;  %vm385_vm13 = vmand %vm1200_vm15, %vm1482_vm7  ;;  %vm300_vm9 = vcmp.lt.s32.totalorder %v1012_v11, 64 }
 0x15e   : > { %795 = vmatpush1.msk.msra.mxu0 %vm1145_vm8, %v990_v7  ;;  %846 = vmatpush1.msk.msra.mxu1 %vm1145_vm8, %v990_v7  ;;  %vm1249_vm8 = vmand %vm1210_vm10, %vm313_vm5  ;;  %v302_v3 = vsel %vm300_vm9, %v299_v50, %v297_v51  ;;  %v301_v4 = vsel %vm300_vm9, %v297_v51, %v299_v50  ;;  %vm266_vm9 = vcmp.lt.s32.totalorder %v262_v61, 16 }
 0x15f   : > { %796 = vmatprep.subr.msk.mxu0 %vm1191_vm11, %v1081_v35  ;;  %824 = vmatprep.subr.msk.mxu1 %vm1191_vm11, %v1081_v35  ;;  %vm281_vm11 = vcmp.lt.s32.totalorder %v1012_v11, 68  ;;  %vm373_vm3 = vmand %vm1200_vm15, %vm272_vm0 }
 0x160   : > { %797 = vmatpush1.msk.msra.mxu0 %vm413_vm12, %v1079_v34  ;;  %847 = vmatpush1.msk.msra.mxu1 %vm413_vm12, %v1079_v34  ;;  %vm372_vm12 = vmand %vm1210_vm10, %vm1481_vm2  ;;  %v283_v6 = vsel %vm281_vm11, %v280_v57, %v278_v58  ;;  %v282_v9 = vsel %vm281_vm11, %v278_v58, %v280_v57  ;;  %vm265_vm2 = vcmp.lt.s32.totalorder %v261_v2, 16  ;;  %vm340_vm11 = vcmp.lt.s32.totalorder %v1012_v11, 4  ;;  %v504_v11 = vld [vmem:[%s1473_s2] sm:$0xff] }
 0x161   : > { %v354_v63 = vpop.permute.xlu1 %353  ;;  %798 = vmatprep.subr.msk.mxu0 %vm385_vm13, %v1256_v60  ;;  %825 = vmatprep.subr.msk.mxu1 %vm385_vm13, %v1256_v60  ;;  %v352_v1 = vpop.permute.xlu0 %351  ;;  %vm1299_vm13 = vmand %vm1063_vm1, %vm1482_vm7 }
 0x162   : > { %799 = vmatpush1.msk.msra.mxu0 %vm1249_vm8, %v322_v62  ;;  %848 = vmatpush1.msk.msra.mxu1 %vm1249_vm8, %v322_v62  ;;  %vm263_vm8 = vcmp.ge.s32.totalorder %v261_v2, 0  ;;  %v357_v10 = vsel %vm355_vm14, %v354_v63, %v352_v1  ;;  %vm1315_vm7 = vmand %vm1063_vm1, %vm272_vm0  ;;  %v356_v13 = vsel %vm355_vm14, %v352_v1, %v354_v63  ;;  %vm1524_vm14 = vcmp.ge.s32.totalorder %v1215_v56, 0 }
 0x163   : > { %800 = vmatprep.subr.msk.mxu0 %vm1200_vm15, %v302_v3  ;;  %826 = vmatprep.subr.msk.mxu1 %vm1200_vm15, %v302_v3  ;;  %vm264_vm15 = vcmp.ge.s32.totalorder %v262_v61, 0  ;;  %vm1333_vm1 = vmand %vm263_vm8, %vm265_vm2  ;;  %vm1525_vm2 = vcmp.lt.s32.totalorder %v1160_v48, 16  ;;  %vm1529_vm8 = vnez %v1489_v27 }
 0x164   : > { %801 = vmatpush1.msk.msra.mxu0 %vm1210_vm10, %v301_v4  ;;  %849 = vmatpush1.msk.msra.mxu1 %vm1210_vm10, %v301_v4  ;;  %vm358_vm10 = vmand %vm1069_vm4, %vm313_vm5 }
 0x165   : > { %802 = vmatprep.subr.msk.mxu0 %vm373_vm3, %v283_v6  ;;  %827 = vmatprep.subr.msk.mxu1 %vm373_vm3, %v283_v6  ;;  %v339_v14 = vpop.permute.xlu1 %338  ;;  %v337_v15 = vpop.permute.xlu0 %336  ;;  %vm1328_vm3 = vmand %vm264_vm15, %vm266_vm9 }
 0x166   : > { %803 = vmatpush1.msk.msra.mxu0 %vm372_vm12, %v282_v9  ;;  %850 = vmatpush1.msk.msra.mxu1 %vm372_vm12, %v282_v9  ;;  %vm343_vm12 = vmand %vm1069_vm4, %vm1524_vm14  ;;  %v341_v18 = vsel %vm340_vm11, %v337_v15, %v339_v14  ;;  %v342_v19 = vsel %vm340_vm11, %v339_v14, %v337_v15 }
 0x167   : > { %804 = vmatprep.subr.msk.mxu0 %vm1299_vm13, %v357_v10  ;;  %828 = vmatprep.subr.msk.mxu1 %vm1299_vm13, %v357_v10  ;;  %vm325_vm13 = vmand %vm1328_vm3, %vm1525_vm2 }
 0x168   : > { %805 = vmatpush1.msk.msra.mxu0 %vm358_vm10, %v356_v13  ;;  %851 = vmatpush1.msk.msra.mxu1 %vm358_vm10, %v356_v13  ;;  %vm324_vm4 = vmand %vm1333_vm1, %vm313_vm5  ;;  %vm1528_vm10 = vcmp.lt.s32.totalorder %v1044_v23, 16 }
 0x169   : > { %596 = vmatprep.subr.mxu0 %v990_v7  ;;  %829 = vmatprep.subr.mxu1 %v990_v7  ;;  %vm285_vm15 = vmand %vm1328_vm3, %vm272_vm0  ;;  %vm1527_vm0 = vcmp.lt.s32.totalorder %v1039_v22, 16 }
 0x16a   : > { %597 = vmatpush1.msra.mxu0 %v986_v5  ;;  %852 = vmatpush1.msra.mxu1 %v986_v5  ;;  %vm481_vm9 = vmand %vm1031_vm6, %vm1527_vm0 }
 0x16b   : > { %806 = vmatprep.subr.msk.mxu0 %vm1315_vm7, %v341_v18  ;;  %830 = vmatprep.subr.msk.mxu1 %vm1315_vm7, %v341_v18  ;;  %vm1526_vm7 = vmmov %vm1524_vm14 }
 0x16c   : > { %807 = vmatpush1.msk.msra.mxu0 %vm343_vm12, %v342_v19  ;;  %853 = vmatpush1.msk.msra.mxu1 %vm343_vm12, %v342_v19  ;;  %vm284_vm5 = vmand %vm1333_vm1, %vm1526_vm7 }
 0x16d   : > { %808 = vmatprep.subr.msk.mxu0 %vm325_vm13, %v322_v62  ;;  %831 = vmatprep.subr.msk.mxu1 %vm325_vm13, %v322_v62  ;;  %vm480_vm11 = vmand %vm1529_vm8, %vm1528_vm10 }
 0x16e   : > { %809 = vmatpush1.msk.msra.mxu0 %vm324_vm4, %v1256_v60  ;;  %854 = vmatpush1.msk.msra.mxu1 %vm324_vm4, %v1256_v60 }
 0x16f   : > { %810 = vmatprep.subr.msk.mxu0 %vm1328_vm3, %v301_v4  ;;  %832 = vmatprep.subr.msk.mxu1 %vm1328_vm3, %v301_v4  ;;  %vm1530_vm3 = vcmask 719872  }
 0x170   : > { %811 = vmatpush1.msk.msra.mxu0 %vm1333_vm1, %v302_v3  ;;  %855 = vmatpush1.msk.msra.mxu1 %vm1333_vm1, %v302_v3 }
 0x171   : > { %812 = vmatprep.subr.msk.mxu0 %vm285_vm15, %v282_v9  ;;  %833 = vmatprep.subr.msk.mxu1 %vm285_vm15, %v282_v9 }
 0x172   : > { %813 = vmatpush1.msk.msra.mxu0 %vm284_vm5, %v283_v6  ;;  %856 = vmatpush1.msk.msra.mxu1 %vm284_vm5, %v283_v6 }
 0x173   : > { %624 = vmatprep.subr.mxu0 %v990_v7  ;;  %834 = vmatprep.subr.mxu1 %v990_v7 }
 0x174   : > { %625 = vmatpush2.msra.mxu0 %v986_v5  ;;  %857 = vmatpush2.msra.mxu1 %v986_v5 }
 0x175   : > { %626 = vmatprep.subr.mxu0 %v921_v0  ;;  %835 = vmatprep.subr.mxu1 %v921_v0 }
 0x176   : > { %627 = vmatpush2.msra.mxu0 %v921_v0  ;;  %858 = vmatpush2.msra.mxu1 %v921_v0 }
 0x177   : > { %628 = vmatprep.subr.mxu0 %v921_v0  ;;  %836 = vmatprep.subr.mxu1 %v921_v0 }
 0x178   : > { %629 = vmatpush2.msra.mxu0 %v921_v0  ;;  %859 = vmatpush2.msra.mxu1 %v921_v0 }
 0x179   : > { %630 = vmatprep.subr.mxu0 %v921_v0  ;;  %837 = vmatprep.subr.mxu1 %v921_v0 }
 0x17a   : > { %631 = vmatpush2.msra.mxu0 %v921_v0  ;;  %860 = vmatpush2.msra.mxu1 %v921_v0 }
 0x17b   : > { %632 = vmatprep.subr.mxu0 %v921_v0  ;;  %838 = vmatprep.subr.mxu1 %v921_v0 }
 0x17c   : > { %633 = vmatpush2.msra.mxu0 %v921_v0  ;;  %861 = vmatpush2.msra.mxu1 %v921_v0  ;;  %v509_v0 = vld [vmem:[%s1473_s2 + $0x28] sm:$0xff] }
 0x17d   : > { %814 = vmatprep.subr.msk.mxu0 %vm481_vm9, %v1122_v41  ;;  %839 = vmatprep.subr.msk.mxu1 %vm481_vm9, %v1122_v41 }
 0x17e   : > { %815 = vmatpush2.msk.msra.mxu0 %vm480_vm11, %v1107_v38  ;;  %862 = vmatpush2.msk.msra.mxu1 %vm480_vm11, %v1107_v38 }
 0x17f   : > { %816 = vmatprep.subr.msk.mxu0 %vm1031_vm6, %v986_v5  ;;  %840 = vmatprep.subr.msk.mxu1 %vm1031_vm6, %v986_v5  ;;  %v508_v5 = vld [vmem:[%s1473_s2 + $0x20] sm:$0xff] }
 0x180   : > { %817 = vmatpush2.msk.msra.mxu0 %vm1529_vm8, %v990_v7  ;;  %863 = vmatpush2.msk.msra.mxu1 %vm1529_vm8, %v990_v7 }
 0x181   : > { %639 = vmatmul.mubr.f32.vlgmr.msra.gmra.mxu0 %v504_v11  ;;  %645 = vmatmul.mubr.f32.vlgmr.msra.gmra.mxu1 %v506_v21 }
 0x182   : > { %779 = vmatprep.mubr.msk.f32.mxu1 %vm1530_vm3, %v509_v0 }
 0x185   : > { %651 = vmatmul.mubr.f32.gmra.mxu1 %v508_v5 }
 0x241   : > { %v640_v20 = vpop.f32.mrf.mxu0  ;;  %v646_v22 = vpop.f32.mrf.mxu1 }
 0x242   : > { %v657_v23 = vmax.f32 %v640_v20, 0.0  ;;  %v659_v24 = vmax.f32 %v646_v22, 0.0 }
 0x243   : > { %v642_v25 = vpop.f32.mrf.mxu0  ;;  %v648_v26 = vpop.f32.mrf.mxu1 }
 0x244   : > { %669 = vst [vmem:[%s1437_s28 + $0x10] sm:$0xff] %v657_v23  ;;  %671 = vst [vmem:[%s1437_s28 + $0x20] sm:$0xff] %v659_v24  ;;  %v658_v7 = vmax.f32 %v642_v25, 0.0  ;;  %v660_v27 = vmax.f32 %v648_v26, 0.0  ;;  %v663_v29 = vadd.f32 %v659_v24, %v657_v23 }
 0x245   : > { %v652_v28 = vpop.f32.mrf.mxu1 }
 0x246   : > { %670 = vst [vmem:[%s1437_s28 + $0x18] sm:$0xff] %v658_v7  ;;  %672 = vst [vmem:[%s1437_s28 + $0x28] sm:$0xff] %v660_v27  ;;  %v661_v30 = vmax.f32 %v652_v28, 0.0  ;;  %v664_v32 = vadd.f32 %v660_v27, %v658_v7 }
 0x247   : > { %v654_v31 = vpop.f32.mrf.mxu1 }
 0x248   : > { %v665_v33 = vadd.f32 %v663_v29, %v661_v30  ;;  %673 = vst [vmem:[%s1437_s28 + $0x30] sm:$0xff] %v661_v30  ;;  %v662_v34 = vmax.f32 %v654_v31, 0.0  ;;  %681 = sbr.rel (!%p974_p4) target bundleno = 597 (0x255), region = 36 }
 0x24a   : > { %667 = vst [vmem:[%s1437_s28] sm:$0xff] %v665_v33  ;;  %v666_v35 = vadd.f32 %v664_v32, %v662_v34  ;;  %674 = vst [vmem:[%s1437_s28 + $0x38] sm:$0xff] %v662_v34 }
 0x24b   : > { %v701_v38 = vld [vmem:[%s1437_s28 + $0x10] sm:$0xff] (%p974_p4)  ;;  %v705_v40 = vld [vmem:[%s1437_s28 + $0x20] sm:$0xff] (%p974_p4) }
 0x24c   : > { %668 = vst [vmem:[%s1437_s28 + $0x8] sm:$0xff] %v666_v35  ;;  %702 = vst [vmem:[%s684_s4 + $0x20] sm:$0xff] (%p974_p4), %v701_v38 }
 0x24d   : > { %v703_v39 = vld [vmem:[%s1437_s28 + $0x18] sm:$0xff]  ;;  %v707_v41 = vld [vmem:[%s1437_s28 + $0x28] sm:$0xff]  ;;  %706 = vst [vmem:[%s684_s4 + $0x40] sm:$0xff] %v705_v40 }
 0x24e   : > { %704 = vst [vmem:[%s684_s4 + $0x28] sm:$0xff] %v703_v39  ;;  %708 = vst [vmem:[%s684_s4 + $0x48] sm:$0xff] %v707_v41 }
 0x24f   : > { %v709_v42 = vld [vmem:[%s1437_s28 + $0x30] sm:$0xff] }
 0x250   : > { %710 = vst [vmem:[%s684_s4 + $0x60] sm:$0xff] %v709_v42 }
 0x251   : > { %v697_v36 = vld [vmem:[%s1437_s28] sm:$0xff]  ;;  %v711_v43 = vld [vmem:[%s1437_s28 + $0x38] sm:$0xff] }
 0x252   : > { %698 = vst [vmem:[%s684_s4] sm:$0xff] %v697_v36  ;;  %712 = vst [vmem:[%s684_s4 + $0x68] sm:$0xff] %v711_v43 }
 0x253   : > { %v699_v37 = vld [vmem:[%s1437_s28 + $0x8] sm:$0xff] }
 0x254   : > { %700 = vst [vmem:[%s684_s4 + $0x8] sm:$0xff] %v699_v37 }
 0x255 PF: > { %p10_p8 = scmp.ge.s32.totalorder %s964_s16, 4   ;;  %s1531_s12 = smov %s915_s13 }
 0x256   : > { %s1532_s13 = smov %s972_s19  ;;  %s1533_s14 = smov %s964_s16 }
 0x257   :  { %12 = sbr.rel (!%p10_p8) target bundleno = 2 (0x2), region = 85 }

</bundles_post_ra>
